<compile_context>
chip_gen: v5e
topology: v5e:2x2
jax: 0.10.0
libtpu: 0.0.40
codegen_flags: <defaults>
</compile_context>

<pallas_src>
import functools

import jax
import jax.numpy as jnp
from jax.experimental import pallas as pl
from jax.experimental.pallas import tpu as pltpu


def _fusion_kernel(x_ref, w1_ref, w2t_ref, o_ref,
                   sum_ref, sumsq_ref, mean_ref, w2s_ref, *,
                   s_total, ts, eps, resident):
    # x_ref   : (Cin, S) resident block  OR  (Cin, ts) streamed tile
    # w1_ref  : (Cmid, Cin)   conv #1 weight
    # w2t_ref : (Cmid, Cout)  conv #2 weight, pre-transposed on the host
    # o_ref   : (Cout, ts)
    # sum/sumsq/mean_ref : (Cmid, 1) f32 InstanceNorm statistics (persist across grid)
    # w2s_ref : (Cmid, Cout)  W2^T with per-channel inv_std folded in (compute dtype)
    phase = pl.program_id(1)
    s_idx = pl.program_id(2)

    if resident:
        # ts is always a multiple of 128 when n_s > 1, so the slice is lane-tile aligned.
        start = pl.multiple_of(s_idx * ts, 128)
        x = x_ref[:, pl.ds(start, ts)]
    else:
        x = x_ref[...]

    # Conv3d(Cin -> Cmid, k=1, bias=False) == W1 @ x, f32 accumulation on the MXU.
    y = jnp.dot(w1_ref[...], x, preferred_element_type=jnp.float32)      # (Cmid, ts)

    @pl.when(jnp.logical_and(phase == 0, s_idx == 0))
    def _init_stats():
        sum_ref[...] = jnp.zeros_like(sum_ref)
        sumsq_ref[...] = jnp.zeros_like(sumsq_ref)

    @pl.when(phase == 0)
    def _accumulate_stats():
        # Single-traversal statistics: sum and sum-of-squares (f32 accumulators).
        sum_ref[...] += jnp.sum(y, axis=-1, keepdims=True)
        sumsq_ref[...] += jnp.sum(y * y, axis=-1, keepdims=True)

    @pl.when(jnp.logical_and(phase == 1, s_idx == 0))
    def _finalize_stats():
        # Hoisted epilogue: mean / inv_std / scaled W2 computed once per batch element
        # and reused for every phase-1 spatial tile.
        inv_n = jnp.float32(1.0 / s_total)
        mean = sum_ref[...] * inv_n                           # (Cmid, 1)
        var = sumsq_ref[...] * inv_n - mean * mean            # biased variance
        var = jnp.maximum(var, 0.0)                           # guard f32 cancellation -> NaN
        inv_std = jax.lax.rsqrt(var + jnp.float32(eps))       # (Cmid, 1), always > 0
        mean_ref[...] = mean
        # Since inv_std > 0:  relu((y - mean) * inv_std) == relu(y - mean) * inv_std,
        # so inv_std is folded into the tiny W2 instead of scaling the (Cmid, ts) tile.
        w2s_ref[...] = (w2t_ref[...].astype(jnp.float32) * inv_std).astype(w2s_ref.dtype)

    @pl.when(phase == 1)
    def _normalize_and_project():
        # Second matmul runs in the streamed compute dtype (bf16 for bf16 activations,
        # single-pass MXU); accumulation stays f32 via preferred_element_type.
        relu_y = jnp.maximum(y - mean_ref[...], 0.0).astype(w2s_ref.dtype)   # (Cmid, ts)
        out = jax.lax.dot_general(                            # contract on Cmid (dim 0, dim 0)
            w2s_ref[...], relu_y, (((0,), (0,)), ((), ())),
            preferred_element_type=jnp.float32)               # (Cout, ts)
        o_ref[...] = out.astype(o_ref.dtype)


def _vmem_budget_bytes():
    """~75% of physical VMEM (≈96 MiB on v5e/v6e, ≈48 MiB on v7x); conservative fallback."""
    cap = None
    try:
        cap = getattr(pltpu.get_tpu_info(), "vmem_capacity_bytes", None)
    except Exception:
        cap = None
    if not cap:
        cap = 64 << 20          # smallest generation (v7x per-TensorCore physical VMEM)
    return int(cap) * 3 // 4


def _pick_tile_s(s_total, max_elems):
    """Largest multiple of 128 that divides s_total and is <= max_elems (min 128)."""
    if s_total % 128 != 0:
        # TODO(synk): pad S to a multiple of 128 (with masked stats) for ragged spatial sizes.
        return s_total
    ts = min(s_total, max(128, (int(max_elems) // 128) * 128))
    while s_total % ts != 0:
        ts -= 128
    return ts


def _choose_plan(S, Cin, Cmid, Cout, itemsize, vmem_budget,
                 x_tile_bytes, max_tile_elems, force_streaming):
    """Pick (resident, ts) against the VMEM byte budget (tiles sized by bytes, not elems)."""
    # Double-buffered weights + stat scratch (padded) + slack for Mosaic internals.
    fixed = 2 * (Cmid * Cin + Cmid * Cout) * 4 + (2 << 20)
    # f32 intermediates Mosaic materializes in VMEM once they exceed the vreg file: y, relu_y.
    per_s_interm = 2 * Cmid * 4
    cap_elems = int(max_tile_elems) if max_tile_elems is not None else 64 * 1024

    if not force_streaming:
        resident_x = 2 * Cin * S * itemsize                    # double-buffered across batch
        per_s = 2 * Cout * itemsize + per_s_interm             # streamed out tile + temporaries
        left = vmem_budget - fixed - resident_x
        if left >= per_s * min(S, 128):
            ts = _pick_tile_s(S, min(left // per_s, cap_elems))
            if resident_x + fixed + per_s * ts <= vmem_budget:
                return True, ts

    # Streaming fallback: x tile sized to ~x_tile_bytes (amortizes ~0.35us per-step overhead),
    # bounded so double-buffered x/out tiles + f32 intermediates still fit the budget.
    per_s = 2 * Cin * itemsize + 2 * Cout * itemsize + per_s_interm
    ts_budget = max(128, (vmem_budget - fixed) // per_s)
    ts_target = max(128, x_tile_bytes // max(1, Cin * itemsize))
    ts = _pick_tile_s(S, min(ts_budget, ts_target, cap_elems))
    return False, ts


def adaptive_fusion(x, w1, w2, *, eps=1e-5, x_tile_bytes=4 << 20,
                    cast_weights_to_activation_dtype=True,
                    max_tile_elems=None, force_streaming=False):
    """AdaptiveFusion forward.

    x : (N, Cin, D, H, W);  w1 : (Cmid, Cin);  w2 : (Cout, Cmid).
    Activations may be f32 or bf16; InstanceNorm statistics / accumulation stay in f32.
    """
    N, Cin, D, H, W = x.shape
    Cmid = w1.shape[0]
    Cout = w2.shape[0]
    S = D * H * W
    itemsize = x.dtype.itemsize

    x2 = x.reshape(N, Cin, S)
    # Deliberate choice: for bf16 activations the (tiny) conv weights are also bf16 so both
    # matmuls run single-pass on the MXU; set the flag False to keep f32 weights (PyTorch-like).
    wdt = x.dtype if cast_weights_to_activation_dtype else jnp.float32
    w1c = w1.astype(wdt)
    w2t = w2.T.astype(wdt)                     # (Cmid, Cout); contracted on dim 0 in-kernel

    vmem_budget = _vmem_budget_bytes()
    resident, ts = _choose_plan(S, Cin, Cmid, Cout, itemsize, vmem_budget,
                                x_tile_bytes, max_tile_elems, force_streaming)
    n_s = S // ts

    kernel = functools.partial(_fusion_kernel, s_total=S, ts=ts, eps=eps, resident=resident)

    if resident:
        # Phase/s-invariant block: x for batch element n is DMA'd from HBM exactly once.
        x_spec = pl.BlockSpec((None, Cin, S), lambda n, p, s: (n, 0, 0))
    else:
        x_spec = pl.BlockSpec((None, Cin, ts), lambda n, p, s: (n, 0, s))
        # TODO(synk): add pipeline_mode=pl.Buffered(3) here if profiling shows exposed DMA
        # latency when tiles are forced small by the VMEM budget.

    x_hbm_bytes = (1 if resident else 2) * N * Cin * S * itemsize
    cost = pl.CostEstimate(
        flops=2 * N * S * (2 * Cmid * Cin + Cmid * Cout),
        transcendentals=N * Cmid,
        bytes_accessed=x_hbm_bytes + N * Cout * S * itemsize
        + (Cmid * Cin + Cmid * Cout) * jnp.dtype(wdt).itemsize,
    )

    out = pl.pallas_call(
        kernel,
        out_shape=jax.ShapeDtypeStruct((N, Cout, S), x.dtype),
        grid_spec=pltpu.PrefetchScalarGridSpec(
            num_scalar_prefetch=0,
            grid=(N, 2, n_s),                       # (batch, phase, spatial tiles)
            in_specs=[
                x_spec,
                pl.BlockSpec((Cmid, Cin), lambda n, p, s: (0, 0)),
                pl.BlockSpec((Cmid, Cout), lambda n, p, s: (0, 0)),
            ],
            # During the stats phase (p == 0) the output block index stays pinned at
            # (n, 0, 0) and the kernel never writes it; phase 1 fills that block at s == 0
            # before the index moves on, so every output block is written exactly once
            # before its single copy-out (no revisits).
            out_specs=pl.BlockSpec((None, Cout, ts), lambda n, p, s: (n, 0, s * p)),
            scratch_shapes=[
                pltpu.VMEM((Cmid, 1), jnp.float32),     # running sum(y)
                pltpu.VMEM((Cmid, 1), jnp.float32),     # running sum(y*y)
                pltpu.VMEM((Cmid, 1), jnp.float32),     # mean (hoisted epilogue)
                pltpu.VMEM((Cmid, Cout), wdt),          # W2^T * inv_std (hoisted epilogue)
            ],
        ),
        compiler_params=pltpu.CompilerParams(
            # TODO(synk): on v7x (2 TensorCores) with N == 1, split the s range across cores
            # and combine partial sum/sumsq before phase 1; batch-only parallelism idles a core.
            dimension_semantics=("parallel", "arbitrary", "arbitrary"),
            vmem_limit_bytes=int(vmem_budget),
        ),
        cost_estimate=cost,
    )(x2, w1c, w2t)

    return out.reshape(N, Cout, D, H, W)


def _reference(x, w1, w2, eps=1e-5):
    # Pure-JAX reference matching PyTorch semantics (biased var, eps=1e-5, no affine).
    y = jnp.einsum("mc,ncdhw->nmdhw", w1, x)
    mean = jnp.mean(y, axis=(2, 3, 4), keepdims=True)
    var = jnp.mean((y - mean) ** 2, axis=(2, 3, 4), keepdims=True)
    y = jnp.maximum((y - mean) * jax.lax.rsqrt(var + eps), 0.0)
    return jnp.einsum("om,nmdhw->nodhw", w2, y)


if __name__ == "__main__":
    key = jax.random.PRNGKey(0)
    kx, k1, k2 = jax.random.split(key, 3)

    N, Cin, D, H, W = 2, 8, 4, 8, 32            # S = D*H*W = 1024
    Cmid, Cout = Cin // 2, 8

    x = jax.random.normal(kx, (N, Cin, D, H, W), dtype=jnp.float32)
    # Conv3d k=1, bias=False weights -> shape (out, in)
    w1 = jax.random.normal(k1, (Cmid, Cin), dtype=jnp.float32) * 0.1
    w2 = jax.random.normal(k2, (Cout, Cmid), dtype=jnp.float32) * 0.1

    ref = _reference(x, w1, w2)

    # 1) Default plan: x resident in VMEM (single HBM read), single spatial tile.
    out = jax.block_until_ready(adaptive_fusion(x, w1, w2))
    assert out.shape == (N, Cout, D, H, W)
    assert jnp.allclose(out, ref, atol=1e-4, rtol=1e-4), "resident plan mismatch"

    # 2) Resident x, multiple spatial tiles: exercises in-kernel pl.ds slicing,
    #    streamed stats across tiles, and the phase-pinned output index map with n_s > 1.
    out = jax.block_until_ready(adaptive_fusion(x, w1, w2, max_tile_elems=256))
    assert jnp.allclose(out, ref, atol=1e-4, rtol=1e-4), "resident multi-tile mismatch"

    # 3) Streaming fallback (x re-read in phase 1), multiple spatial tiles.
    out = jax.block_until_ready(
        adaptive_fusion(x, w1, w2, max_tile_elems=256, force_streaming=True))
    assert jnp.allclose(out, ref, atol=1e-4, rtol=1e-4), "streaming plan mismatch"

    # 4) bf16 activation smoke test (weights deliberately cast to bf16; shape/finite check).
    out_bf16 = jax.block_until_ready(adaptive_fusion(x.astype(jnp.bfloat16), w1, w2))
    assert out_bf16.shape == (N, Cout, D, H, W)
    assert bool(jnp.all(jnp.isfinite(out_bf16.astype(jnp.float32))))

    print("KERNEL_OK")
</pallas_src>

<mosaic_0001>
module attributes {stable_mosaic.version = 11 : i64} {
  func.func @_fusion_kernel(%arg0: i32, %arg1: i32, %arg2: i32, %arg3: memref<1x8x1024xf32, #tpu.memory_space<vmem>>, %arg4: memref<4x8xf32, #tpu.memory_space<vmem>>, %arg5: memref<4x8xf32, #tpu.memory_space<vmem>>, %arg6: memref<1x8x1024xf32, #tpu.memory_space<vmem>>, %arg7: memref<4x1xf32, #tpu.memory_space<vmem>>, %arg8: memref<4x1xf32, #tpu.memory_space<vmem>>, %arg9: memref<4x1xf32, #tpu.memory_space<vmem>>, %arg10: memref<4x8xf32, #tpu.memory_space<vmem>>) attributes {dimension_semantics = [#tpu.dimension_semantics<parallel>, #tpu.dimension_semantics<arbitrary>, #tpu.dimension_semantics<arbitrary>], iteration_bounds = array<i64: 2, 2, 1>, scalar_prefetch = 0 : i64, scratch_operands = 4 : i64, tpu.core_type = #tpu.core_type<tc>, window_params = [{transform_indices = @transform_0, window_bounds = array<i64: 1, 8, 1024>}, {pipeline_mode = #tpu.pipeline_mode<synchronous>, transform_indices = @transform_1, window_bounds = array<i64: 4, 8>}, {pipeline_mode = #tpu.pipeline_mode<synchronous>, transform_indices = @transform_2, window_bounds = array<i64: 4, 8>}, {transform_indices = @transform_3, window_bounds = array<i64: 1, 8, 1024>}]} {
    %c1024_i32 = arith.constant 1024 : i32
    %0 = arith.muli %arg2, %c1024_i32 : i32
    %1 = tpu.assume_multiple %0, 128 : i32
    %c0 = arith.constant 0 : index
    %c0_0 = arith.constant 0 : index
    %2 = arith.index_cast %1 : i32 to index
    %3 = vector.load %arg3[%c0, %c0_0, %2] : memref<1x8x1024xf32, #tpu.memory_space<vmem>>, vector<1x8x1024xf32>
    %4 = vector.shape_cast %3 : vector<1x8x1024xf32> to vector<8x1024xf32>
    %c0_1 = arith.constant 0 : index
    %c0_2 = arith.constant 0 : index
    %5 = vector.load %arg4[%c0_1, %c0_2] : memref<4x8xf32, #tpu.memory_space<vmem>>, vector<4x8xf32>
    %cst = arith.constant dense<0.000000e+00> : vector<4x1024xf32>
    %6 = tpu.matmul %5, %4, %cst {dimension_numbers = #tpu.dot_dimension_numbers<[1], [0], [0], [1], [0, 0, 1, 1], [], []>} : vector<4x8xf32>, vector<8x1024xf32>, vector<4x1024xf32> -> vector<4x1024xf32>
    %c0_i32 = arith.constant 0 : i32
    %7 = arith.cmpi eq, %arg1, %c0_i32 : i32
    %c0_i32_3 = arith.constant 0 : i32
    %8 = arith.cmpi eq, %arg2, %c0_i32_3 : i32
    %9 = arith.andi %7, %8 : i1
    %10 = arith.extui %9 : i1 to i32
    %c0_i32_4 = arith.constant 0 : i32
    %11 = arith.cmpi ne, %10, %c0_i32_4 : i32
    scf.if %11 {
      %cst_11 = arith.constant 0.000000e+00 : f32
      %23 = vector.broadcast %cst_11 : f32 to vector<4x1xf32>
      %c0_12 = arith.constant 0 : index
      %c0_13 = arith.constant 0 : index
      %24 = vector.load %arg7[%c0_12, %c0_13] : memref<4x1xf32, #tpu.memory_space<vmem>>, vector<4x1xf32>
      tpu.vector_store %arg7[%c0_12, %c0_13], %23 {strides = array<i32>} : memref<4x1xf32, #tpu.memory_space<vmem>>, vector<4x1xf32>,
      %cst_14 = arith.constant 0.000000e+00 : f32
      %25 = vector.broadcast %cst_14 : f32 to vector<4x1xf32>
      %c0_15 = arith.constant 0 : index
      %c0_16 = arith.constant 0 : index
      %26 = vector.load %arg8[%c0_15, %c0_16] : memref<4x1xf32, #tpu.memory_space<vmem>>, vector<4x1xf32>
      tpu.vector_store %arg8[%c0_15, %c0_16], %25 {strides = array<i32>} : memref<4x1xf32, #tpu.memory_space<vmem>>, vector<4x1xf32>,
    } else {
    }
    %c0_i32_5 = arith.constant 0 : i32
    %12 = arith.cmpi eq, %arg1, %c0_i32_5 : i32
    %13 = arith.extui %12 : i1 to i32
    %c0_i32_6 = arith.constant 0 : i32
    %14 = arith.cmpi ne, %13, %c0_i32_6 : i32
    scf.if %14 {
      %c0_11 = arith.constant 0 : index
      %c0_12 = arith.constant 0 : index
      %23 = vector.load %arg7[%c0_11, %c0_12] : memref<4x1xf32, #tpu.memory_space<vmem>>, vector<4x1xf32>
      %cst_13 = arith.constant dense<0.000000e+00> : vector<4xf32>
      %24 = vector.multi_reduction <add>, %6, %cst_13 [1] : vector<4x1024xf32> to vector<4xf32>
      %25 = vector.shape_cast %24 : vector<4xf32> to vector<4x1xf32>
      %26 = arith.addf %23, %25 : vector<4x1xf32>
      %c0_14 = arith.constant 0 : index
      %c0_15 = arith.constant 0 : index
      %27 = vector.load %arg7[%c0_14, %c0_15] : memref<4x1xf32, #tpu.memory_space<vmem>>, vector<4x1xf32>
      tpu.vector_store %arg7[%c0_14, %c0_15], %26 {strides = array<i32>} : memref<4x1xf32, #tpu.memory_space<vmem>>, vector<4x1xf32>,
      %c0_16 = arith.constant 0 : index
      %c0_17 = arith.constant 0 : index
      %28 = vector.load %arg8[%c0_16, %c0_17] : memref<4x1xf32, #tpu.memory_space<vmem>>, vector<4x1xf32>
      %29 = arith.mulf %6, %6 : vector<4x1024xf32>
      %cst_18 = arith.constant dense<0.000000e+00> : vector<4xf32>
      %30 = vector.multi_reduction <add>, %29, %cst_18 [1] : vector<4x1024xf32> to vector<4xf32>
      %31 = vector.shape_cast %30 : vector<4xf32> to vector<4x1xf32>
      %32 = arith.addf %28, %31 : vector<4x1xf32>
      %c0_19 = arith.constant 0 : index
      %c0_20 = arith.constant 0 : index
      %33 = vector.load %arg8[%c0_19, %c0_20] : memref<4x1xf32, #tpu.memory_space<vmem>>, vector<4x1xf32>
      tpu.vector_store %arg8[%c0_19, %c0_20], %32 {strides = array<i32>} : memref<4x1xf32, #tpu.memory_space<vmem>>, vector<4x1xf32>,
    } else {
    }
    %c1_i32 = arith.constant 1 : i32
    %15 = arith.cmpi eq, %arg1, %c1_i32 : i32
    %c0_i32_7 = arith.constant 0 : i32
    %16 = arith.cmpi eq, %arg2, %c0_i32_7 : i32
    %17 = arith.andi %15, %16 : i1
    %18 = arith.extui %17 : i1 to i32
    %c0_i32_8 = arith.constant 0 : i32
    %19 = arith.cmpi ne, %18, %c0_i32_8 : i32
    scf.if %19 {
      %c0_11 = arith.constant 0 : index
      %c0_12 = arith.constant 0 : index
      %23 = vector.load %arg7[%c0_11, %c0_12] : memref<4x1xf32, #tpu.memory_space<vmem>>, vector<4x1xf32>
      %cst_13 = arith.constant 9.765625E-4 : f32
      %24 = vector.broadcast %cst_13 : f32 to vector<4x1xf32>
      %25 = arith.mulf %23, %24 : vector<4x1xf32>
      %c0_14 = arith.constant 0 : index
      %c0_15 = arith.constant 0 : index
      %26 = vector.load %arg8[%c0_14, %c0_15] : memref<4x1xf32, #tpu.memory_space<vmem>>, vector<4x1xf32>
      %cst_16 = arith.constant 9.765625E-4 : f32
      %27 = vector.broadcast %cst_16 : f32 to vector<4x1xf32>
      %28 = arith.mulf %26, %27 : vector<4x1xf32>
      %29 = arith.mulf %25, %25 : vector<4x1xf32>
      %30 = arith.subf %28, %29 : vector<4x1xf32>
      %cst_17 = arith.constant 0.000000e+00 : f32
      %31 = vector.broadcast %cst_17 : f32 to vector<4x1xf32>
      %32 = arith.maximumf %30, %31 : vector<4x1xf32>
      %cst_18 = arith.constant 9.99999974E-6 : f32
      %33 = vector.broadcast %cst_18 : f32 to vector<4x1xf32>
      %34 = arith.addf %32, %33 : vector<4x1xf32>
      %35 = math.rsqrt %34 : vector<4x1xf32>
      %c0_19 = arith.constant 0 : index
      %c0_20 = arith.constant 0 : index
      %36 = vector.load %arg9[%c0_19, %c0_20] : memref<4x1xf32, #tpu.memory_space<vmem>>, vector<4x1xf32>
      tpu.vector_store %arg9[%c0_19, %c0_20], %25 {strides = array<i32>} : memref<4x1xf32, #tpu.memory_space<vmem>>, vector<4x1xf32>,
      %c0_21 = arith.constant 0 : index
      %c0_22 = arith.constant 0 : index
      %37 = vector.load %arg5[%c0_21, %c0_22] : memref<4x8xf32, #tpu.memory_space<vmem>>, vector<4x8xf32>
      %38 = vector.broadcast %35 : vector<4x1xf32> to vector<4x8xf32>
      %39 = arith.mulf %37, %38 : vector<4x8xf32>
      %c0_23 = arith.constant 0 : index
      %c0_24 = arith.constant 0 : index
      %40 = vector.load %arg10[%c0_23, %c0_24] : memref<4x8xf32, #tpu.memory_space<vmem>>, vector<4x8xf32>
      tpu.vector_store %arg10[%c0_23, %c0_24], %39 {strides = array<i32>} : memref<4x8xf32, #tpu.memory_space<vmem>>, vector<4x8xf32>,
    } else {
    }
    %c1_i32_9 = arith.constant 1 : i32
    %20 = arith.cmpi eq, %arg1, %c1_i32_9 : i32
    %21 = arith.extui %20 : i1 to i32
    %c0_i32_10 = arith.constant 0 : i32
    %22 = arith.cmpi ne, %21, %c0_i32_10 : i32
    scf.if %22 {
      %c0_11 = arith.constant 0 : index
      %c0_12 = arith.constant 0 : index
      %23 = vector.load %arg9[%c0_11, %c0_12] : memref<4x1xf32, #tpu.memory_space<vmem>>, vector<4x1xf32>
      %24 = vector.broadcast %23 : vector<4x1xf32> to vector<4x1024xf32>
      %25 = arith.subf %6, %24 : vector<4x1024xf32>
      %cst_13 = arith.constant 0.000000e+00 : f32
      %26 = vector.broadcast %cst_13 : f32 to vector<4x1024xf32>
      %27 = arith.maximumf %25, %26 : vector<4x1024xf32>
      %c0_14 = arith.constant 0 : index
      %c0_15 = arith.constant 0 : index
      %28 = vector.load %arg10[%c0_14, %c0_15] : memref<4x8xf32, #tpu.memory_space<vmem>>, vector<4x8xf32>
      %cst_16 = arith.constant dense<0.000000e+00> : vector<8x1024xf32>
      %29 = tpu.matmul %28, %27, %cst_16 {dimension_numbers = #tpu.dot_dimension_numbers<[0], [0], [1], [1], [0, 1, 1, 1], [], []>} : vector<4x8xf32>, vector<4x1024xf32>, vector<8x1024xf32> -> vector<8x1024xf32>
      %c0_17 = arith.constant 0 : index
      %c0_18 = arith.constant 0 : index
      %c0_19 = arith.constant 0 : index
      %30 = vector.load %arg6[%c0_17, %c0_18, %c0_19] : memref<1x8x1024xf32, #tpu.memory_space<vmem>>, vector<1x8x1024xf32>
      %31 = vector.shape_cast %30 : vector<1x8x1024xf32> to vector<8x1024xf32>
      %32 = vector.shape_cast %29 : vector<8x1024xf32> to vector<1x8x1024xf32>
      tpu.vector_store %arg6[%c0_17, %c0_18, %c0_19], %32 {strides = array<i32>} : memref<1x8x1024xf32, #tpu.memory_space<vmem>>, vector<1x8x1024xf32>,
    } else {
    }
    return
  }
  func.func @transform_0(%arg0: i32, %arg1: i32, %arg2: i32) -> (i32, i32, i32) {
    %c0_i32 = arith.constant 0 : i32
    %c0_i32_0 = arith.constant 0 : i32
    %c0_i32_1 = arith.constant 0 : i32
    return %arg0, %c0_i32, %c0_i32_0 : i32, i32, i32
  }
  func.func @transform_1(%arg0: i32, %arg1: i32, %arg2: i32) -> (i32, i32) {
    %c0_i32 = arith.constant 0 : i32
    %c0_i32_0 = arith.constant 0 : i32
    %c0_i32_1 = arith.constant 0 : i32
    return %c0_i32, %c0_i32_0 : i32, i32
  }
  func.func @transform_2(%arg0: i32, %arg1: i32, %arg2: i32) -> (i32, i32) {
    %c0_i32 = arith.constant 0 : i32
    %c0_i32_0 = arith.constant 0 : i32
    %c0_i32_1 = arith.constant 0 : i32
    return %c0_i32, %c0_i32_0 : i32, i32
  }
  func.func @transform_3(%arg0: i32, %arg1: i32, %arg2: i32) -> (i32, i32, i32) {
    %0 = arith.muli %arg2, %arg1 : i32
    %c0_i32 = arith.constant 0 : i32
    %c0_i32_0 = arith.constant 0 : i32
    return %arg0, %c0_i32, %0 : i32, i32, i32
  }
}

</mosaic_0001>

<bundles_post_ra>
// kernel: tpu_custom_call.1
= control target key start
LH: loop header
LB: loop body
LE: loop exit
PB: predicated region body
PF: predicated region fallthrough
CT: control target
= control target key end

     0   :  { %s1540_s0 = inlined_call_operand.hbm [shape: f32[2,8,1024], index: 0, kind: input, shape index: {}]   ;;  %s1541_s1 = inlined_call_operand.hbm [shape: f32[4,8], index: 1, kind: input, shape index: {}]   ;;  %s1542_s2 = inlined_call_operand.hbm [shape: f32[4,8], index: 2, kind: input, shape index: {}]   ;;  %s1543_s3 = inlined_call_operand.hbm [shape: f32[2,8,1024], index: 3, kind: output, shape index: {}]  }
   0x1   :  { %1544 = sst [smem:[#allocation16_spill]] %s1541_s1 }
   0x2   :  { %1545 = sst [smem:[#allocation17_spill]] %s1542_s2 }
   0x3   :  { %8 = vsyncpa [#allocation7], 0 }
   0x4   :  { %10 = vsyncpa [#allocation7 + $0x1], 0 }
   0x5   :  { %11 = vsyncpa [#allocation10], 0 }
   0x6   :  { %12 = vsyncpa [#allocation8], 0 }
   0x7   :  { %14 = vsyncpa [#allocation8 + $0x1], 0  ;;  %s1277_s12 = smov 0   ;;  %s1279_s13 = smov 0  }
   0x8   :  { %s1281_s14 = smov 0   ;;  %s1283_s15 = smov 0  }
   0x9   :  { %s1285_s16 = smov 0   ;;  %s1287_s17 = smov 0  }
   0xa   :  { %s1289_s18 = smov 0   ;;  %s1291_s19 = smov 0  }
   0xb LB: > { %s900_s20 = sadd.s32 4294967295, %s1250_s19   ;;  %s901_s21 = sadd.s32 4294967294, %s1250_s19   ;;  %s1250_s19 = sphi %s1291_s19, %s20_s19   ;;  %s1246_s18 = sphi %s1289_s18, %s1560_s18   ;;  %s1242_s17 = sphi %s1287_s17, %s1559_s17   ;;  %s1238_s16 = sphi %s1285_s16, %s1558_s16   ;;  %s1234_s15 = sphi %s1283_s15, %s1557_s15   ;;  %s1230_s14 = sphi %s1281_s14, %s1556_s14   ;;  %s1226_s13 = sphi %s1279_s13, %s1555_s13   ;;  %s1222_s12 = sphi %s1277_s12, %s1554_s12  }
   0xc   : > { %p59_p0 = scmp.ne.s32.totalorder %s1226_s13, %s1222_s12  ;;  %p1321_p1 = scmp.eq.s32.totalorder %s900_s20, 0 }
   0xd   : > { %p135_p2 = scmp.eq.s32.totalorder %s901_s21, 3  ;;  %p902_p4 = scmp.ge.s32.totalorder %s1250_s19, 1 }
   0xe   : > { %p1327_p3 = por %p1321_p1, %p59_p0  ;;  %p142_p6 = scmp.lt.s32.totalorder %s1250_s19, 5 }
   0xf   : > { %p1332_p5 = por %p135_p2, %p59_p0  ;;  %s1549_s1 = sld [smem:[#allocation16_spill]] }
  0x10   : > { %p1340_p7 = pnand %p902_p4, %p142_p6  ;;  %s1252_s29 = smov [#allocation9]  }
  0x11   : > { %s156_s30 = sshll.u32 %s1252_s29, 4  ;;  %s1551_s2 = sld [smem:[#allocation17_spill]]  ;;  %s157_s30 = int_to_ptr.vmem [resolvable:$true] %s156_s30 }
  0x12   : > { %p963_p8 = pneg %p1340_p7  ;;  %s1253_s7 = smov [#allocation11]  }
  0x13   : > { %s168_s8 = sshll.u32 %s1253_s7, 4  ;;  %p129_p10 = scmp.eq.s32.totalorder %s900_s20, 3  ;;  %s169_s8 = int_to_ptr.vmem [resolvable:$true] %s168_s8 }
  0x14   : > { %p964_p9 = pnand %p963_p8, %p1321_p1  ;;  %s35_s9 = sadd.s32 1, %s1242_s17 }
  0x15   : > { %s154_s27 = sshll.u32 %s1549_s1, 4  ;;  %p37_p11 = scmp.ge.s32.totalorder %s35_s9, 2  ;;  %s155_s27 = int_to_ptr.hbm [resolvable:$true] %s154_s27 }
  0x16   : > { %966 = dma.hbm_to_vmem [thread:$0]  (!%p964_p9), %s155_s27, 64, %s157_s30, [#allocation10]  }
  0x17   : > { %s166_s6 = sshll.u32 %s1551_s2, 4  ;;  %s39_s10 = sadd.s32 1, %s1246_s18  ;;  %s167_s6 = int_to_ptr.hbm [resolvable:$true] %s166_s6 }
  0x18   : > { %969 = dma.hbm_to_vmem [thread:$0]  (!%p964_p9), %s167_s6, 64, %s169_s8, [#allocation10]  }
  0x19   : > { %p53_p12 = scmp.ne.s32.totalorder %s1230_s14, %s1226_s13  ;;  %p54_p13 = scmp.eq.s32.totalorder %s1250_s19, 0 }
  0x1a   : > { %s1562_s9 = smov (%p37_p11, %s35_s9), 0  ;;  %s1564_s10 = smov (!%p37_p11, %s39_s10), %s1246_s18 }
  0x1b   : > { %s46_s11 = sadd.s32 1, %s1230_s14  ;;  %p1360_p0 = por %p129_p10, %p53_p12 }
  0x1c   : > { %p41_p2 = scmp.ge.s32.totalorder %s1564_s10, 2  ;;  %p1364_p4 = por %p54_p13, %p53_p12 }
  0x1d   : > { %s179_s20 = sand.u32 1, %s1230_s14   ;;  %s947_s26 = sshll.u32 %s1246_s18, 6 }
  0x1e   : > { %s1566_s10 = smov (%p41_p2, %s1564_s10), 0  ;;  %p980_p6 = scmp.lt.s32.totalorder %s1250_s19, 4 }
  0x1f   : > { %s906_s27 = sshll.u32 %s179_s20, 6  ;;  %s43_s29 = ssub.s32 %s1246_s18, %s1566_s10 }
  0x20   : > { %p44_p8 = scmp.eq.s32.totalorder %s43_s29, 0  ;;  %s188_s5 = scalar_lea.hbm %s1540_s0, %s947_s26 }
  0x21   : > { %s190_s6 = sshll.u32 %s188_s5, 4  ;;  %s183_s7 = scalar_lea.vmem [#allocation6], %s906_s27  ;;  %s191_s6 = int_to_ptr.hbm [resolvable:$true] %s190_s6 }
  0x22   : > { %s192_s8 = sshll.u32 %s183_s7, 4  ;;  %p971_p9 = pnand %p980_p6, %p1364_p4  ;;  %s193_s8 = int_to_ptr.vmem [resolvable:$true] %s192_s8 }
  0x23   : > { %s1379_s1 = scalar_select %p44_p8, %s1230_s14, %s46_s11  }
  0x24   : > { %s180_s2 = scalar_lea.sflag [#allocation7], %s179_s20  ;;  %201 = sbr.rel (%p1340_p7) target bundleno = 853 (0x355), region = 32 }
  0x25   : > { %973 = dma.hbm_to_vmem [thread:$0]  (!%p971_p9), %s191_s6, 1024, %s193_s8, %s180_s2  }
  0x26   : > { %s1386_s29 = sand.u32 (!%p1340_p7), 1, %s1226_s13  }
  0x27   : > { %s910_s26 = sshll.u32 (!%p1340_p7), %s1386_s29, 6  ;;  %s204_s27 = scalar_lea.sflag (!%p1340_p7), [#allocation7], %s1386_s29 }
  0x28   : > { %s207_s11 = scalar_lea.vmem (!%p1340_p7), [#allocation6], %s910_s26 }
  0x29   : > { %1209 = dma.done.wait (%p1327_p3), %s204_s27, 1024  }
  0x2a   : > { %1211 = vsyncadd (%p1327_p3), %s204_s27, 4294966272 }
  0x2b   : > { %1213 = dma.done.wait (%p1321_p1), [#allocation10], 128  }
  0x2c   : > { %1215 = vsyncadd (%p1321_p1), [#allocation10], 4294967168  ;;  %vm257_vm0 = vcmask 64512   ;;  %v250_v0 = vld [vmem:[%s207_s11 + $0x10] sm:$0xff]  ;;  %v251_v1 = vld [vmem:[%s207_s11 + $0x18] sm:$0xff]  ;;  %p421_p1 = scmp.eq.s32.totalorder %s1234_s15, 0 }
  0x2d   : > { %v256_v2 = vld [vmem:[#allocation9] sm:$0xf]  ;;  %316 = vmatpush.msra.mxu2 %v250_v0  ;;  %336 = vmatpush.msra.mxu3 %v251_v1  ;;  %v254_v3 = vld [vmem:[%s207_s11 + $0x30] sm:$0xff]  ;;  %v255_v4 = vld [vmem:[%s207_s11 + $0x38] sm:$0xff]  ;;  %s1427_s2 = scalar_lea.vmem [#allocation12], %s910_s26  ;;  %vm427_vm1 = vcmask (%p421_p1), 3072  }
  0x2e   : > { %v248_v5 = vld [vmem:[%s207_s11] sm:$0xff]  ;;  %916 = vmatmul.msk.f32.vlgmr.msra.gmra.mxu2 %vm257_vm0, %v256_v2  ;;  %917 = vmatmul.msk.f32.vlgmr.msra.gmra.mxu3 %vm257_vm0, %v256_v2  ;;  %v249_v6 = vld [vmem:[%s207_s11 + $0x8] sm:$0xff]  ;;  %v1254_v17 = vmov (%p421_p1), 0.0  }
  0x2f   : > { %396 = vmatpush.msrb.mxu2 %v254_v3  ;;  %416 = vmatpush.msrb.mxu3 %v255_v4  ;;  %v252_v7 = vld [vmem:[%s207_s11 + $0x20] sm:$0xff]  ;;  %v253_v8 = vld [vmem:[%s207_s11 + $0x28] sm:$0xff]  ;;  %428 = vst.msk [vmem:[#allocation2] sm:$0xf] (%p421_p1), %vm427_vm1, %v1254_v17 }
  0x30   : > { %276 = vmatpush.msra.mxu0 %v248_v5  ;;  %296 = vmatpush.msra.mxu1 %v249_v6  ;;  %429 = vst.msk [vmem:[#allocation3] sm:$0xf] (%p421_p1), %vm427_vm1, %v1254_v17 }
  0x31   : > { %914 = vmatmul.msk.f32.vlgmr.msra.gmra.mxu0 %vm257_vm0, %v256_v2  ;;  %915 = vmatmul.msk.f32.vlgmr.msra.gmra.mxu1 %vm257_vm0, %v256_v2 }
  0x32   : > { %356 = vmatpush.msrb.mxu0 %v252_v7  ;;  %376 = vmatpush.msrb.mxu1 %v253_v8 }
  0x36   : > { %920 = vmatmul.msk.f32.vlgmr.msrb.gmra.mxu2 %vm257_vm0, %v256_v2  ;;  %921 = vmatmul.msk.f32.vlgmr.msrb.gmra.mxu3 %vm257_vm0, %v256_v2 }
  0x39   : > { %918 = vmatmul.msk.f32.vlgmr.msrb.gmra.mxu0 %vm257_vm0, %v256_v2  ;;  %919 = vmatmul.msk.f32.vlgmr.msrb.gmra.mxu1 %vm257_vm0, %v256_v2 }
  0xae   : > { %v1409_v9 = vpop.f32.mrf.mxu0  ;;  %v1411_v10 = vpop.f32.mrf.mxu1 }
  0xb1   : > { %v1413_v11 = vpop.f32.mrf.mxu2  ;;  %v1415_v12 = vpop.f32.mrf.mxu3 }
  0xb5   : > { %426 = sbr.rel (!%p421_p1) target bundleno = 186 (0xba), region = 48 }
  0xb6   : > { %v1417_v13 = vpop.f32.mrf.mxu0  ;;  %v1419_v14 = vpop.f32.mrf.mxu1 }
  0xb9   : > { %v1421_v15 = vpop.f32.mrf.mxu2  ;;  %v1423_v16 = vpop.f32.mrf.mxu3 }
  0xba PF: > { %p923_p3 = scmp.ne.s32.totalorder %s1234_s15, 0 }
  0xbc   : > { %432 = sbr.rel (%p923_p3) target bundleno = 336 (0x150), region = 52 }
  0xc1   : > { %vm434_vm2 = vcmask 1043456   ;;  %v456_v18 = vmul.f32 %v1409_v9, %v1409_v9  ;;  %v457_v19 = vmul.f32 %v1411_v10, %v1411_v10  ;;  %v458_v23 = vmul.f32 %v1413_v11, %v1413_v11  ;;  %v433_v56 = vld [vmem:[#allocation2] sm:$0xf]  ;;  %v455_v59 = vld [vmem:[#allocation3] sm:$0xf] }
  0xc2   : > { %v435_v20 = vsel %vm434_vm2, %v1409_v9, 0.0  ;;  %v436_v21 = vsel %vm434_vm2, %v1411_v10, 0.0  ;;  %v438_v22 = vsel %vm434_vm2, %v1413_v11, 0.0  ;;  %v440_v25 = vsel %vm434_vm2, %v1415_v12, 0.0 }
  0xc3   : > { %v437_v24 = vadd.f32 %v436_v21, %v435_v20  ;;  %v459_v26 = vmul.f32 %v1415_v12, %v1415_v12  ;;  %v464_v28 = vsel %vm434_vm2, %v456_v18, 0.0  ;;  %v442_v29 = vsel %vm434_vm2, %v1417_v13, 0.0 }
  0xc4   : > { %v460_v30 = vmul.f32 %v1417_v13, %v1417_v13  ;;  %v465_v31 = vsel %vm434_vm2, %v457_v19, 0.0  ;;  %v467_v32 = vsel %vm434_vm2, %v458_v23, 0.0  ;;  %v444_v35 = vsel %vm434_vm2, %v1419_v14, 0.0 }
  0xc5   : > { %v439_v27 = vadd.f32 %v438_v22, %v437_v24  ;;  %v466_v34 = vadd.f32 %v465_v31, %v464_v28  ;;  %v461_v36 = vmul.f32 %v1419_v14, %v1419_v14  ;;  %v469_v37 = vsel %vm434_vm2, %v459_v26, 0.0 }
  0xc6   : > { %v446_v40 = vsel %vm434_vm2, %v1421_v15, 0.0  ;;  %v462_v41 = vmul.f32 %v1421_v15, %v1421_v15  ;;  %v471_v42 = vsel %vm434_vm2, %v460_v30, 0.0  ;;  %v448_v45 = vsel %vm434_vm2, %v1423_v16, 0.0 }
  0xc7   : > { %v441_v33 = vadd.f32 %v440_v25, %v439_v27  ;;  %v468_v39 = vadd.f32 %v467_v32, %v466_v34  ;;  %v473_v46 = vsel %vm434_vm2, %v461_v36, 0.0  ;;  %v463_v49 = vmul.f32 %v1423_v16, %v1423_v16 }
  0xc8   : > { %v475_v50 = vsel %vm434_vm2, %v462_v41, 0.0  ;;  %vm453_vm3 = vcmask 3072  }
  0xc9   : > { %v443_v38 = vadd.f32 %v442_v29, %v441_v33  ;;  %v470_v44 = vadd.f32 %v469_v37, %v468_v39  ;;  %v477_v54 = vsel %vm434_vm2, %v463_v49, 0.0 }
  0xcb   : > { %v445_v43 = vadd.f32 %v444_v35, %v443_v38  ;;  %v472_v48 = vadd.f32 %v471_v42, %v470_v44 }
  0xcd   : > { %v447_v47 = vadd.f32 %v446_v40, %v445_v43  ;;  %v474_v52 = vadd.f32 %v473_v46, %v472_v48 }
  0xcf   : > { %v449_v51 = vadd.f32 %v448_v45, %v447_v47  ;;  %v476_v53 = vadd.f32 %v475_v50, %v474_v52 }
  0xd1   : > { %450 = vadd.xlane.f32.xlu0 %v449_v51  ;;  %v478_v55 = vadd.f32 %v477_v54, %v476_v53 }
  0xd9   : > { %479 = vadd.xlane.f32.xlu0 %v478_v55 }
 0x144   : > { %v451_v57 = vpop.xlane.xlu0 %450 }
 0x145   : > { %v452_v58 = vadd.f32 %v451_v57, %v433_v56 }
 0x147   : > { %454 = vst.msk [vmem:[#allocation2] sm:$0xf] %vm453_vm3, %v452_v58 }
 0x14c   : > { %v480_v60 = vpop.xlane.xlu0 %479 }
 0x14d   : > { %v481_v61 = vadd.f32 %v480_v60, %v455_v59 }
 0x14f   : > { %482 = vst.msk [vmem:[#allocation3] sm:$0xf] %vm453_vm3, %v481_v61 }
 0x150 PF: > { %p483_p7 = scmp.eq.s32.totalorder %s1234_s15, 1 }
 0x151   : > { %v488_v62 = vld [vmem:[#allocation2] sm:$0xf] (%p483_p7)  ;;  %vm506_vm4 = vcmask (%p483_p7), 3072   ;;  %v1255_v0 = vmov (%p483_p7), 0   ;;  %v508_v22 = vld [vmem:[#allocation11] sm:$0xf] (%p483_p7) }
 0x152   : > { %487 = sbr.rel (!%p483_p7) target bundleno = 487 (0x1e7), region = 56  ;;  %1054 = vset.pattern.permute.xlu0 (%p483_p7), %v1255_v0  ;;  %v489_v1 = vmul.f32 (%p483_p7), 0.0009765625, %v488_v62  ;;  %vm515_vm8 = vcmask (%p483_p7), 60416  }
 0x154   : > { %v492_v3 = vmul.f32 (%p483_p7), %v489_v1, %v489_v1  ;;  %507 = vst.msk [vmem:[#allocation4] sm:$0xf] (%p483_p7), %vm506_vm4, %v489_v1 }
 0x156   : > { %v490_v63 = vld [vmem:[#allocation3] sm:$0xf] (%p483_p7) }
 0x157   : > { %v491_v2 = vmul.f32 0.0009765625, %v490_v63 }
 0x159   : > { %v493_v4 = vsub.f32 %v491_v2, %v492_v3 }
 0x15b   : > { %v494_v5 = vmax.f32 %v493_v4, 0.0 }
 0x15d   : > { %v495_v6 = vadd.f32 1e-05, %v494_v5 }
 0x15f   : > { %1055 = vrsqrt.f32 %v495_v6  ;;  %vm502_vm5 = vweird.f32 %v495_v6 }
 0x165   : > { %v1056_v7 = vpop.eup %1055 }
 0x166   : > { %v497_v8 = vmul.f32 %v1056_v7, %v495_v6  ;;  %vm503_vm6 = vweird.f32 %v1056_v7 }
 0x167   : > { %vm504_vm7 = vmor %vm502_vm5, %vm503_vm6 }
 0x168   : > { %v498_v17 = vmul.f32 %v1056_v7, %v497_v8 }
 0x16a   : > { %v499_v18 = vmul.f32 0.5, %v498_v17 }
 0x16c   : > { %v500_v19 = vsub.f32 1.5, %v499_v18 }
 0x16e   : > { %v501_v20 = vmul.f32 %v1056_v7, %v500_v19 }
 0x170   : > { %v505_v21 = vsel %vm504_vm7, %v1056_v7, %v501_v20 }
 0x171   : > { %511 = vperm.xlu0 %1054, %v505_v21  }
 0x1e3   : > { %v512_v23 = vpop.permute.xlu0 %511 }
 0x1e4   : > { %v514_v24 = vmul.f32 %v512_v23, %v508_v22 }
 0x1e6   : > { %516 = vst.msk [vmem:[#allocation5] sm:$0xf] %vm515_vm8, %v514_v24 }
 0x1e7 PF: > { %p925_p10 = scmp.ne.s32.totalorder %s1234_s15, 1 }
 0x1e9   : > { %519 = sbr.rel (%p925_p10) target bundleno = 838 (0x346), region = 60 }
 0x1ee   : > { %v520_v25 = vld [vmem:[#allocation4] sm:$0xf]  ;;  %v1256_v26 = vmov 0   ;;  %v542_v27 = vld [vmem:[#allocation5] sm:$0xf]  ;;  %vm579_vm9 = vcmask 1043456  }
 0x1ef   : > { %1057 = vset.pattern.permute.xlu0 %v1256_v26  ;;  %vm575_vm10 = vcmask 31744  }
 0x1f0   : > { %523 = vperm.xlu0 %1057, %v520_v25  }
 0x212   : > { %543 = vxpose.xlu0.b32.start.end [1/1] (short) (narrow) %v542_v27, 8 }
 0x262   : > { %v524_v28 = vpop.permute.xlu0 %523 }
 0x263   : > { %v526_v29 = vsub.f32 %v1409_v9, %v524_v28  ;;  %v527_v30 = vsub.f32 %v1411_v10, %v524_v28  ;;  %v528_v31 = vsub.f32 %v1413_v11, %v524_v28  ;;  %v529_v32 = vsub.f32 %v1415_v12, %v524_v28 }
 0x264   : > { %v530_v33 = vsub.f32 %v1417_v13, %v524_v28  ;;  %v531_v34 = vsub.f32 %v1419_v14, %v524_v28  ;;  %v532_v35 = vsub.f32 %v1421_v15, %v524_v28  ;;  %v533_v36 = vsub.f32 %v1423_v16, %v524_v28 }
 0x265   : > { %v534_v37 = vmax.f32 %v526_v29, 0.0  ;;  %v535_v38 = vmax.f32 %v527_v30, 0.0  ;;  %v536_v39 = vmax.f32 %v528_v31, 0.0  ;;  %v537_v40 = vmax.f32 %v529_v32, 0.0 }
 0x266   : > { %v538_v41 = vmax.f32 %v530_v33, 0.0  ;;  %v539_v9 = vmax.f32 %v531_v34, 0.0  ;;  %v540_v42 = vmax.f32 %v532_v35, 0.0  ;;  %v541_v10 = vmax.f32 %v533_v36, 0.0 }
 0x267   : > { %926 = vmatpush.msk.msra.mxu0 %vm579_vm9, %v534_v37  ;;  %928 = vmatpush.msk.msra.mxu1 %vm579_vm9, %v535_v38 }
 0x268   : > { %930 = vmatpush.msk.msra.mxu2 %vm579_vm9, %v536_v39  ;;  %932 = vmatpush.msk.msra.mxu3 %vm579_vm9, %v537_v40 }
 0x269   : > { %934 = vmatpush.msk.msrb.mxu0 %vm579_vm9, %v538_v41  ;;  %936 = vmatpush.msk.msrb.mxu1 %vm579_vm9, %v539_v9 }
 0x26a   : > { %938 = vmatpush.msk.msrb.mxu2 %vm579_vm9, %v540_v42  ;;  %940 = vmatpush.msk.msrb.mxu3 %vm579_vm9, %v541_v10 }
 0x2b6   : > { %v559_v11 = vpop.trf.xlu0 }
 0x2b7   : > { %927 = vmatmul.msk.f32.vlgmr.msra.gmra.mxu0 %vm575_vm10, %v559_v11  ;;  %929 = vmatmul.msk.f32.vlgmr.msra.gmra.mxu1 %vm575_vm10, %v559_v11 }
 0x2b8   : > { %931 = vmatmul.msk.f32.vlgmr.msra.gmra.mxu2 %vm575_vm10, %v559_v11  ;;  %933 = vmatmul.msk.f32.vlgmr.msra.gmra.mxu3 %vm575_vm10, %v559_v11 }
 0x2bf   : > { %935 = vmatmul.msk.f32.vlgmr.msrb.gmra.mxu0 %vm575_vm10, %v559_v11  ;;  %937 = vmatmul.msk.f32.vlgmr.msrb.gmra.mxu1 %vm575_vm10, %v559_v11 }
 0x2c0   : > { %939 = vmatmul.msk.f32.vlgmr.msrb.gmra.mxu2 %vm575_vm10, %v559_v11  ;;  %941 = vmatmul.msk.f32.vlgmr.msrb.gmra.mxu3 %vm575_vm10, %v559_v11 }
 0x334   : > { %v621_v12 = vpop.f32.mrf.mxu0  ;;  %v641_v13 = vpop.f32.mrf.mxu1 }
 0x335   : > { %764 = vst [vmem:[%s1427_s2] sm:$0xff] %v621_v12 }
 0x336   : > { %765 = vst [vmem:[%s1427_s2 + $0x8] sm:$0xff] %v641_v13 }
 0x33b   : > { %v661_v14 = vpop.f32.mrf.mxu2  ;;  %v681_v15 = vpop.f32.mrf.mxu3 }
 0x33c   : > { %766 = vst [vmem:[%s1427_s2 + $0x10] sm:$0xff] %v661_v14  ;;  %v701_v16 = vpop.f32.mrf.mxu0  ;;  %v721_v43 = vpop.f32.mrf.mxu1 }
 0x33d   : > { %767 = vst [vmem:[%s1427_s2 + $0x18] sm:$0xff] %v681_v15 }
 0x33e   : > { %768 = vst [vmem:[%s1427_s2 + $0x20] sm:$0xff] %v701_v16 }
 0x33f   : > { %769 = vst [vmem:[%s1427_s2 + $0x28] sm:$0xff] %v721_v43 }
 0x343   : > { %v741_v44 = vpop.f32.mrf.mxu2  ;;  %v761_v45 = vpop.f32.mrf.mxu3 }
 0x344   : > { %770 = vst [vmem:[%s1427_s2 + $0x30] sm:$0xff] %v741_v44 }
 0x345   : > { %771 = vst [vmem:[%s1427_s2 + $0x38] sm:$0xff] %v761_v45 }
 0x346 PF: > { %s950_s15 = sshll.u32 %s1238_s16, 6  ;;  %s789_s25 = sshll.u32 %s1427_s2, 4  ;;  %s790_s25 = int_to_ptr.vmem [resolvable:$true] %s789_s25 }
 0x347   : > { %s787_s28 = scalar_lea.hbm %s1543_s3, %s950_s15  ;;  %s773_s30 = scalar_lea.sflag [#allocation8], %s1386_s29 }
 0x348   : > { %s791_s20 = sshll.u32 %s787_s28, 4  ;;  %s1168_s16 = scalar_lea.hbm %s1543_s3, 128  ;;  %s792_s20 = int_to_ptr.hbm [resolvable:$true] %s791_s20 }
 0x349   : > { %s1162_s4 = sshra.s32 %s792_s20, 4  ;;  %s1163_s4 = int_to_ptr.hbm [resolvable:$true] %s1162_s4 }
 0x34a   : > { %s1164_s5 = scalar_lea.hbm %s1163_s4, 64  ;;  %p1169_p2 = scmp.lt.s32.totalorder %s1163_s4, %s1543_s3 }
 0x34b   : > { %p1165_p11 = scmp.ne.s32.totalorder %s1163_s4, %s1164_s5  ;;  %p1170_p4 = scmp.lt.s32.totalorder %s1168_s16, %s1164_s5 }
 0x34d   : > { %p1166_p12 = pnand %p1165_p11, %p1360_p0  ;;  %p1171_p6 = por %p1170_p4, %p1169_p2 }
 0x34f   : > { %p1167_p13 = pneg %p1166_p12 }
 0x351   : > { %p1172_p8 = pnand %p1171_p6, %p1167_p13 }
 0x353   : > { %1175 = shalt.err (!%p1172_p8)
}
 0x354   : > { %961 = dma.vmem_to_hbm [thread:$0]  (%p1360_p0), %s790_s25, 1024, %s792_s20, %s773_s30  }
 0x355 PF: > { %p983_p9 = scmp.ge.s32.totalorder %s1250_s19, 2  ;;  %s803_s29 = sand.u32 1, %s1222_s12  }
 0x356   : > { %s804_s27 = scalar_lea.sflag [#allocation8], %s803_s29 }
 0x357   : > { %p975_p1 = pnand %p983_p9, %p1332_p5 }
 0x359   : > { %p976_p3 = pneg %p975_p1 }
 0x35b   : > { %1217 = dma.done.wait (%p976_p3), %s804_s27, 1024  }
 0x35c   : > { %1219 = vsyncadd (%p976_p3), %s804_s27, 4294966272  ;;  %s20_s19 = sadd.s32 1, %s1250_s19   ;;  %s1554_s12 = smov %s1226_s13 }
 0x35d   : > { %p17_p7 = scmp.ge.s32.totalorder %s20_s19, 6   ;;  %s1555_s13 = smov %s1230_s14 }
 0x35e   : > { %s1556_s14 = smov %s1379_s1  ;;  %s1557_s15 = smov %s1242_s17 }
 0x35f   : > { %s1558_s16 = smov %s1246_s18  ;;  %s1559_s17 = smov %s1562_s9 }
 0x360   : > { %s1560_s18 = smov %s1566_s10  ;;  %19 = sbr.rel (!%p17_p7) target bundleno = 11 (0xb), region = 102 }
 0x365   :  { %810 = vsyncpa [#allocation7], 1 }
 0x366   :  { %812 = vsyncpa [#allocation7 + $0x1], 1 }
 0x367   :  { %813 = vsyncpa [#allocation10], 1 }
 0x368   :  { %814 = vsyncpa [#allocation8], 1 }
 0x369   :  { %816 = vsyncpa [#allocation8 + $0x1], 1 }

</bundles_post_ra>
